<compile_context>
chip_gen: v7x
topology: tpu7x:2x2x1
jax: 0.10.0
libtpu: 0.0.40
codegen_flags: <defaults>
</compile_context>

<pallas_src>
import numpy as np
import jax
import jax.numpy as jnp
from jax.experimental import pallas as pl
from jax.experimental.pallas import tpu as pltpu


# ----------------------------- Pallas kernels ------------------------------

def _linear_relu_kernel(x_ref, w_ref, b_ref, o_ref):
    # y = relu(x @ W + b)
    y = jnp.dot(x_ref[...], w_ref[...], preferred_element_type=jnp.float32)
    o_ref[...] = jnp.maximum(y + b_ref[...], 0.0)


def _disc_kernel(s_ref, f_ref, w1a_ref, w1b_ref, b1_ref, w2r_ref, b2_ref, o_ref):
    # concat([s, f], -1) @ W1 == s @ W1[:D] + f @ W1[D:]  (no HBM concat)
    h = jnp.dot(s_ref[...], w1a_ref[...], preferred_element_type=jnp.float32)
    h = h + jnp.dot(f_ref[...], w1b_ref[...], preferred_element_type=jnp.float32)
    # Dropout(0.5) == identity in eval mode.
    h = jnp.maximum(h + b1_ref[...], 0.0)
    # Second layer (4D -> 1): VPU multiply + lane reduction (w2 as a row),
    # instead of an N=1-output MXU matmul.  b2 arrives as an SMEM scalar.
    p = jnp.sum(h * w2r_ref[...], axis=-1, keepdims=True) + b2_ref[0, 0]
    # Lane-dense unmasked store: replicate logit across 128 lanes; the wrapper
    # slices lane 0.  Avoids masked last-dim-1 partial stores.
    o_ref[...] = jnp.broadcast_to(p, o_ref.shape)


# ------------------------------ wrappers ------------------------------------

def _round_up(n, m):
    return ((n + m - 1) // m) * m


def _pick_row_tile(n_rows):
    """Row tile: big enough to feed the MXU, >=2 grid steps when possible
    (v7x megacore), capped at 256 rows, sublane (8) aligned."""
    half = -(-n_rows // 2)          # cdiv(n, 2)
    tile = -(-half // 8) * 8        # round up to sublane multiple
    return max(8, min(256, tile))


def _pad_rows(x, n_pad):
    n = x.shape[0]
    if n_pad != n:
        x = jnp.pad(x, ((0, n_pad - n), (0, 0)))
    return x


def backbone_pallas(x, w, b):
    """relu(x @ w + b) ; x: (N, in_dim), w: (in_dim, D), b: (1, D) -> (N, D)"""
    n, in_dim = x.shape
    d = w.shape[1]
    row_tile = _pick_row_tile(n)
    n_pad = _round_up(n, row_tile)
    x_p = _pad_rows(x, n_pad)
    out = pl.pallas_call(
        _linear_relu_kernel,
        out_shape=jax.ShapeDtypeStruct((n_pad, d), jnp.float32),
        grid_spec=pltpu.PrefetchScalarGridSpec(
            num_scalar_prefetch=0,
            grid=(n_pad // row_tile,),
            in_specs=[
                pl.BlockSpec((row_tile, in_dim), lambda i: (i, 0)),
                pl.BlockSpec((in_dim, d), lambda i: (0, 0)),
                pl.BlockSpec((1, d), lambda i: (0, 0)),
            ],
            out_specs=pl.BlockSpec((row_tile, d), lambda i: (i, 0)),
        ),
        compiler_params=pltpu.CompilerParams(dimension_semantics=("parallel",)),
    )(x_p, w, b)
    return out[:n]


def discriminator_pallas(samples, features, w1, b1, w2, b2):
    """Fused 2-layer MLP head over (samples || features): (N, D)x2 -> (N,)."""
    n, d = samples.shape
    h = w1.shape[1]
    w1a, w1b = w1[:d], w1[d:]          # top / bottom halves of the (2D, 4D) W1
    w2_row = w2.reshape(1, h)          # (4D, 1) -> (1, 4D) row for VPU reduce

    row_tile = _pick_row_tile(n)
    n_pad = _round_up(n, row_tile)
    s_p = _pad_rows(samples, n_pad)
    f_p = _pad_rows(features, n_pad)

    out = pl.pallas_call(
        _disc_kernel,
        out_shape=jax.ShapeDtypeStruct((n_pad, 128), jnp.float32),
        grid_spec=pltpu.PrefetchScalarGridSpec(
            num_scalar_prefetch=0,
            grid=(n_pad // row_tile,),
            in_specs=[
                pl.BlockSpec((row_tile, d), lambda i: (i, 0)),
                pl.BlockSpec((row_tile, d), lambda i: (i, 0)),
                pl.BlockSpec((d, h), lambda i: (0, 0)),
                pl.BlockSpec((d, h), lambda i: (0, 0)),
                pl.BlockSpec((1, h), lambda i: (0, 0)),
                pl.BlockSpec((1, h), lambda i: (0, 0)),
                pl.BlockSpec(memory_space=pltpu.MemorySpace.SMEM),  # scalar b2
            ],
            out_specs=pl.BlockSpec((row_tile, 128), lambda i: (i, 0)),
        ),
        compiler_params=pltpu.CompilerParams(dimension_semantics=("parallel",)),
    )(s_p, f_p, w1a, w1b, b1, w2_row, b2)
    return out[:n, 0]  # .view((-1,)) in the PyTorch code


# ------------------------------ TNC forward ---------------------------------

def tnc_forward(embedding, params, *, seq_len):
    """Reproduces TNC.forward.  embedding: (b, in_dim)."""
    # backbone(embedding, class_head=False) -> (b, fc_dim)
    mod_features = backbone_pallas(embedding, params["bb_w"], params["bb_b"])
    b, dim = mod_features.shape
    bs = b // seq_len

    # ---- static source-row indices for the pos / neg pairs ------------------
    # pos pair r: sample = mod[r // (seq_len-1)],
    #             feature = mod[g*seq_len + pos_j[p]]  (off-diagonal of eye(seq_len))
    pos_j = np.nonzero(~np.eye(seq_len, dtype=bool))[1]
    pos_samp_idx = np.repeat(np.arange(b), seq_len - 1)
    pos_feat_idx = (np.arange(bs)[:, None] * seq_len + pos_j[None, :]).reshape(-1)
    # neg pair r: sample = mod[r // (bs-1)],
    #             feature = mod[neg_g[a]*seq_len + t]  (off-diagonal of eye(bs))
    neg_g = np.nonzero(~np.eye(bs, dtype=bool))[1]
    neg_samp_idx = np.repeat(np.arange(b), bs - 1)
    neg_feat_idx = (neg_g[:, None] * seq_len + np.arange(seq_len)[None, :]).reshape(-1)

    n_pos = b * (seq_len - 1)
    n_neg = b * (bs - 1)

    samp_idx = jnp.asarray(np.concatenate([pos_samp_idx, neg_samp_idx]).astype(np.int32))
    feat_idx = jnp.asarray(np.concatenate([pos_feat_idx, neg_feat_idx]).astype(np.int32))

    samples = jnp.take(mod_features, samp_idx, axis=0)    # (n_pos+n_neg, D)
    features = jnp.take(mod_features, feat_idx, axis=0)   # (n_pos+n_neg, D)

    # single fused discriminator call over stacked pos + neg rows
    logits = discriminator_pallas(samples, features,
                                  params["d_w1"], params["d_b1"],
                                  params["d_w2"], params["d_b2"])
    disc_pos = logits[:n_pos]
    disc_neg = logits[n_pos:n_pos + n_neg]

    neighbors = jnp.ones((n_pos,), dtype=jnp.float32)
    non_neighbors = jnp.zeros((n_neg,), dtype=jnp.float32)
    return [disc_pos, disc_neg], [neighbors, non_neighbors]


# ----------------------- deterministic parameter init -----------------------

def init_params(key, in_dim, fc_dim):
    k = jax.random.split(key, 6)

    def xavier(key, shape):  # shape = (fan_in, fan_out)
        bound = np.sqrt(6.0 / (shape[0] + shape[1]))
        return jax.random.uniform(key, shape, jnp.float32, -bound, bound)

    def torch_bias(key, fan_in, fan_out):
        bound = 1.0 / np.sqrt(fan_in)
        return jax.random.uniform(key, (1, fan_out), jnp.float32, -bound, bound)

    d2, d4 = 2 * fc_dim, 4 * fc_dim
    return {
        # synthetic backbone Linear(in_dim -> fc_dim)
        "bb_w": xavier(k[0], (in_dim, fc_dim)),
        "bb_b": torch_bias(k[1], in_dim, fc_dim),
        # discriminator: Linear(2D -> 4D), ReLU, Dropout, Linear(4D -> 1)
        "d_w1": xavier(k[2], (d2, d4)),
        "d_b1": torch_bias(k[3], d2, d4),
        "d_w2": xavier(k[4], (d4, 1)),
        "d_b2": torch_bias(k[5], d4, 1),
    }


# -------------------------- pure-JAX reference -------------------------------

def _disc_ref(x_all, p):
    h = jnp.maximum(x_all @ p["d_w1"] + p["d_b1"], 0.0)
    return (h @ p["d_w2"] + p["d_b2"])[:, 0]


def tnc_forward_ref(embedding, p, *, seq_len):
    mod = jnp.maximum(embedding @ p["bb_w"] + p["bb_b"], 0.0)
    b, dim = mod.shape
    bs = b // seq_len
    split = mod.reshape(bs, seq_len, dim)
    _, pj = np.nonzero(~np.eye(seq_len, dtype=bool))
    pos_s = jnp.repeat(mod, seq_len - 1, axis=0)
    pos_f = split[:, pj, :].reshape(b * (seq_len - 1), dim)
    _, ng = np.nonzero(~np.eye(bs, dtype=bool))
    neg_s = jnp.repeat(mod, bs - 1, axis=0)
    neg_f = split[ng].reshape(b * (bs - 1), dim)
    return (_disc_ref(jnp.concatenate([pos_s, pos_f], -1), p),
            _disc_ref(jnp.concatenate([neg_s, neg_f], -1), p))


# --------------------------------- main --------------------------------------

if __name__ == "__main__":
    seq_len = 4      # args.dataset_config['seq_len']
    bs = 2           # number of sequences in the batch
    b = bs * seq_len # rows seen by the backbone
    in_dim = 16      # synthetic embedding dim fed to the backbone
    fc_dim = 32      # backbone_config['fc_dim']

    key = jax.random.PRNGKey(0)
    k_x, k_p = jax.random.split(key)
    embedding = jax.random.normal(k_x, (b, in_dim), dtype=jnp.float32)
    params = init_params(k_p, in_dim, fc_dim)

    fwd = jax.jit(lambda emb, p: tnc_forward(emb, p, seq_len=seq_len))
    (disc_pos, disc_neg), (neighbors, non_neighbors) = fwd(embedding, params)
    jax.block_until_ready((disc_pos, disc_neg, neighbors, non_neighbors))

    # sanity check against a pure-JAX reference
    ref_pos, ref_neg = tnc_forward_ref(embedding, params, seq_len=seq_len)
    assert disc_pos.shape == (b * (seq_len - 1),)
    assert disc_neg.shape == (b * (bs - 1),)
    np.testing.assert_allclose(np.asarray(disc_pos), np.asarray(ref_pos),
                               rtol=1e-4, atol=1e-4)
    np.testing.assert_allclose(np.asarray(disc_neg), np.asarray(ref_neg),
                               rtol=1e-4, atol=1e-4)
    assert bool(jnp.all(neighbors == 1.0)) and bool(jnp.all(non_neighbors == 0.0))

    print("KERNEL_OK")
</pallas_src>

<mosaic_0001>
module attributes {stable_mosaic.version = 11 : i64} {
  func.func @_linear_relu_kernel(%arg0: i32, %arg1: memref<8x16xf32, #tpu.memory_space<vmem>>, %arg2: memref<16x32xf32, #tpu.memory_space<vmem>>, %arg3: memref<1x32xf32, #tpu.memory_space<vmem>>, %arg4: memref<8x32xf32, #tpu.memory_space<vmem>>) attributes {dimension_semantics = [#tpu.dimension_semantics<parallel>], iteration_bounds = array<i64: 1>, scalar_prefetch = 0 : i64, scratch_operands = 0 : i64, tpu.core_type = #tpu.core_type<tc>, window_params = [{transform_indices = @transform_0, window_bounds = array<i64: 8, 16>}, {pipeline_mode = #tpu.pipeline_mode<synchronous>, transform_indices = @transform_1, window_bounds = array<i64: 16, 32>}, {pipeline_mode = #tpu.pipeline_mode<synchronous>, transform_indices = @transform_2, window_bounds = array<i64: 1, 32>}, {transform_indices = @transform_3, window_bounds = array<i64: 8, 32>}]} {
    %c0 = arith.constant 0 : index
    %c0_0 = arith.constant 0 : index
    %0 = vector.load %arg1[%c0, %c0_0] : memref<8x16xf32, #tpu.memory_space<vmem>>, vector<8x16xf32>
    %c0_1 = arith.constant 0 : index
    %c0_2 = arith.constant 0 : index
    %1 = vector.load %arg2[%c0_1, %c0_2] : memref<16x32xf32, #tpu.memory_space<vmem>>, vector<16x32xf32>
    %cst = arith.constant dense<0.000000e+00> : vector<8x32xf32>
    %2 = tpu.matmul %0, %1, %cst {dimension_numbers = #tpu.dot_dimension_numbers<[1], [0], [0], [1], [0, 0, 1, 1], [], []>} : vector<8x16xf32>, vector<16x32xf32>, vector<8x32xf32> -> vector<8x32xf32>
    %c0_3 = arith.constant 0 : index
    %c0_4 = arith.constant 0 : index
    %3 = vector.load %arg3[%c0_3, %c0_4] : memref<1x32xf32, #tpu.memory_space<vmem>>, vector<1x32xf32>
    %4 = vector.broadcast %3 : vector<1x32xf32> to vector<8x32xf32>
    %5 = arith.addf %2, %4 : vector<8x32xf32>
    %cst_5 = arith.constant 0.000000e+00 : f32
    %6 = vector.broadcast %cst_5 : f32 to vector<8x32xf32>
    %7 = arith.maximumf %5, %6 : vector<8x32xf32>
    %c0_6 = arith.constant 0 : index
    %c0_7 = arith.constant 0 : index
    %8 = vector.load %arg4[%c0_6, %c0_7] : memref<8x32xf32, #tpu.memory_space<vmem>>, vector<8x32xf32>
    tpu.vector_store %arg4[%c0_6, %c0_7], %7 {strides = array<i32>} : memref<8x32xf32, #tpu.memory_space<vmem>>, vector<8x32xf32>,
    return
  }
  func.func @transform_0(%arg0: i32) -> (i32, i32) {
    %c0_i32 = arith.constant 0 : i32
    %c0_i32_0 = arith.constant 0 : i32
    return %arg0, %c0_i32 : i32, i32
  }
  func.func @transform_1(%arg0: i32) -> (i32, i32) {
    %c0_i32 = arith.constant 0 : i32
    %c0_i32_0 = arith.constant 0 : i32
    %c0_i32_1 = arith.constant 0 : i32
    return %c0_i32, %c0_i32_0 : i32, i32
  }
  func.func @transform_2(%arg0: i32) -> (i32, i32) {
    %c0_i32 = arith.constant 0 : i32
    %c0_i32_0 = arith.constant 0 : i32
    %c0_i32_1 = arith.constant 0 : i32
    return %c0_i32, %c0_i32_0 : i32, i32
  }
  func.func @transform_3(%arg0: i32) -> (i32, i32) {
    %c0_i32 = arith.constant 0 : i32
    %c0_i32_0 = arith.constant 0 : i32
    return %arg0, %c0_i32 : i32, i32
  }
}

module attributes {stable_mosaic.version = 11 : i64} {
  func.func @_disc_kernel(%arg0: i32, %arg1: memref<16x32xf32, #tpu.memory_space<vmem>>, %arg2: memref<16x32xf32, #tpu.memory_space<vmem>>, %arg3: memref<32x128xf32, #tpu.memory_space<vmem>>, %arg4: memref<32x128xf32, #tpu.memory_space<vmem>>, %arg5: memref<1x128xf32, #tpu.memory_space<vmem>>, %arg6: memref<1x128xf32, #tpu.memory_space<vmem>>, %arg7: memref<1x1xf32, #tpu.memory_space<smem>>, %arg8: memref<16x128xf32, #tpu.memory_space<vmem>>) attributes {dimension_semantics = [#tpu.dimension_semantics<parallel>], iteration_bounds = array<i64: 2>, scalar_prefetch = 0 : i64, scratch_operands = 0 : i64, tpu.core_type = #tpu.core_type<tc>, window_params = [{transform_indices = @transform_0, window_bounds = array<i64: 16, 32>}, {transform_indices = @transform_1, window_bounds = array<i64: 16, 32>}, {pipeline_mode = #tpu.pipeline_mode<synchronous>, transform_indices = @transform_2, window_bounds = array<i64: 32, 128>}, {pipeline_mode = #tpu.pipeline_mode<synchronous>, transform_indices = @transform_3, window_bounds = array<i64: 32, 128>}, {pipeline_mode = #tpu.pipeline_mode<synchronous>, transform_indices = @transform_4, window_bounds = array<i64: 1, 128>}, {pipeline_mode = #tpu.pipeline_mode<synchronous>, transform_indices = @transform_5, window_bounds = array<i64: 1, 128>}, {transform_indices = @transform_6, window_bounds = array<i64: 1, 1>}, {transform_indices = @transform_7, window_bounds = array<i64: 16, 128>}]} {
    %c0 = arith.constant 0 : index
    %c0_0 = arith.constant 0 : index
    %0 = vector.load %arg1[%c0, %c0_0] : memref<16x32xf32, #tpu.memory_space<vmem>>, vector<16x32xf32>
    %c0_1 = arith.constant 0 : index
    %c0_2 = arith.constant 0 : index
    %1 = vector.load %arg3[%c0_1, %c0_2] : memref<32x128xf32, #tpu.memory_space<vmem>>, vector<32x128xf32>
    %cst = arith.constant dense<0.000000e+00> : vector<16x128xf32>
    %2 = tpu.matmul %0, %1, %cst {dimension_numbers = #tpu.dot_dimension_numbers<[1], [0], [0], [1], [0, 0, 1, 1], [], []>} : vector<16x32xf32>, vector<32x128xf32>, vector<16x128xf32> -> vector<16x128xf32>
    %c0_3 = arith.constant 0 : index
    %c0_4 = arith.constant 0 : index
    %3 = vector.load %arg2[%c0_3, %c0_4] : memref<16x32xf32, #tpu.memory_space<vmem>>, vector<16x32xf32>
    %c0_5 = arith.constant 0 : index
    %c0_6 = arith.constant 0 : index
    %4 = vector.load %arg4[%c0_5, %c0_6] : memref<32x128xf32, #tpu.memory_space<vmem>>, vector<32x128xf32>
    %cst_7 = arith.constant dense<0.000000e+00> : vector<16x128xf32>
    %5 = tpu.matmul %3, %4, %cst_7 {dimension_numbers = #tpu.dot_dimension_numbers<[1], [0], [0], [1], [0, 0, 1, 1], [], []>} : vector<16x32xf32>, vector<32x128xf32>, vector<16x128xf32> -> vector<16x128xf32>
    %6 = arith.addf %2, %5 : vector<16x128xf32>
    %c0_8 = arith.constant 0 : index
    %c0_9 = arith.constant 0 : index
    %7 = vector.load %arg5[%c0_8, %c0_9] : memref<1x128xf32, #tpu.memory_space<vmem>>, vector<1x128xf32>
    %8 = vector.broadcast %7 : vector<1x128xf32> to vector<16x128xf32>
    %9 = arith.addf %6, %8 : vector<16x128xf32>
    %cst_10 = arith.constant 0.000000e+00 : f32
    %10 = vector.broadcast %cst_10 : f32 to vector<16x128xf32>
    %11 = arith.maximumf %9, %10 : vector<16x128xf32>
    %c0_11 = arith.constant 0 : index
    %c0_12 = arith.constant 0 : index
    %12 = vector.load %arg6[%c0_11, %c0_12] : memref<1x128xf32, #tpu.memory_space<vmem>>, vector<1x128xf32>
    %13 = vector.broadcast %12 : vector<1x128xf32> to vector<16x128xf32>
    %14 = arith.mulf %11, %13 : vector<16x128xf32>
    %cst_13 = arith.constant dense<0.000000e+00> : vector<16xf32>
    %15 = vector.multi_reduction <add>, %14, %cst_13 [1] : vector<16x128xf32> to vector<16xf32>
    %16 = vector.shape_cast %15 : vector<16xf32> to vector<16x1xf32>
    %c0_14 = arith.constant 0 : index
    %c0_15 = arith.constant 0 : index
    %17 = memref.load %arg7[%c0_14, %c0_15] : memref<1x1xf32, #tpu.memory_space<smem>>
    %18 = vector.broadcast %17 : f32 to vector<16x1xf32>
    %19 = arith.addf %16, %18 : vector<16x1xf32>
    %20 = vector.shape_cast %19 : vector<16x1xf32> to vector<16x1xf32>
    %21 = vector.broadcast %20 : vector<16x1xf32> to vector<16x128xf32>
    %c0_16 = arith.constant 0 : index
    %c0_17 = arith.constant 0 : index
    %22 = vector.load %arg8[%c0_16, %c0_17] : memref<16x128xf32, #tpu.memory_space<vmem>>, vector<16x128xf32>
    tpu.vector_store %arg8[%c0_16, %c0_17], %21 {strides = array<i32>} : memref<16x128xf32, #tpu.memory_space<vmem>>, vector<16x128xf32>,
    return
  }
  func.func @transform_0(%arg0: i32) -> (i32, i32) {
    %c0_i32 = arith.constant 0 : i32
    %c0_i32_0 = arith.constant 0 : i32
    return %arg0, %c0_i32 : i32, i32
  }
  func.func @transform_1(%arg0: i32) -> (i32, i32) {
    %c0_i32 = arith.constant 0 : i32
    %c0_i32_0 = arith.constant 0 : i32
    return %arg0, %c0_i32 : i32, i32
  }
  func.func @transform_2(%arg0: i32) -> (i32, i32) {
    %c0_i32 = arith.constant 0 : i32
    %c0_i32_0 = arith.constant 0 : i32
    %c0_i32_1 = arith.constant 0 : i32
    return %c0_i32, %c0_i32_0 : i32, i32
  }
  func.func @transform_3(%arg0: i32) -> (i32, i32) {
    %c0_i32 = arith.constant 0 : i32
    %c0_i32_0 = arith.constant 0 : i32
    %c0_i32_1 = arith.constant 0 : i32
    return %c0_i32, %c0_i32_0 : i32, i32
  }
  func.func @transform_4(%arg0: i32) -> (i32, i32) {
    %c0_i32 = arith.constant 0 : i32
    %c0_i32_0 = arith.constant 0 : i32
    %c0_i32_1 = arith.constant 0 : i32
    return %c0_i32, %c0_i32_0 : i32, i32
  }
  func.func @transform_5(%arg0: i32) -> (i32, i32) {
    %c0_i32 = arith.constant 0 : i32
    %c0_i32_0 = arith.constant 0 : i32
    %c0_i32_1 = arith.constant 0 : i32
    return %c0_i32, %c0_i32_0 : i32, i32
  }
  func.func @transform_6(%arg0: i32) -> (i32, i32) {
    %c0_i32 = arith.constant 0 : i32
    %c0_i32_0 = arith.constant 0 : i32
    %c0_i32_1 = arith.constant 0 : i32
    return %c0_i32, %c0_i32_0 : i32, i32
  }
  func.func @transform_7(%arg0: i32) -> (i32, i32) {
    %c0_i32 = arith.constant 0 : i32
    %c0_i32_0 = arith.constant 0 : i32
    return %arg0, %c0_i32 : i32, i32
  }
}

</mosaic_0001>

<bundles_post_ra>
// kernel: _lambda_.2
= control target key start
LH: loop header
LB: loop body
LE: loop exit
PB: predicated region body
PF: predicated region fallthrough
CT: control target
= control target key end

     0   :  { %v123_v0 = vmov 0.0|0.0   ;;  %vm124_vm0 = vmmov 0   ;;  %v125_v3 = vmov 0.0   ;;  %vm24_vm1 = vcmask 130048   ;;  %s161_s1 = inlined_call_operand.vmem [shape: f32[16,32], index: 1, kind: input, shape index: {}]   ;;  %s162_s0 = inlined_call_operand.vmem [shape: f32[8,16], index: 0, kind: input, shape index: {}]   ;;  %s163_s2 = inlined_call_operand.vmem [shape: f32[1,32], index: 2, kind: input, shape index: {}]   ;;  %s164_s3 = inlined_call_operand.vmem [shape: f32[8,32], index: 3, kind: output, shape index: {}]  }
   0x1   :  { %117 = vmatprep.subr.bf16.mxu0 %v123_v0  ;;  %v15_v1 = vld [vmem:[%s161_s1] sm:$0xff]  ;;  %v16_v2 = vld [vmem:[%s161_s1 + $0x8] sm:$0xff]  ;;  %114 = vmatprep.mubr.msk.f32.mxu0 %vm124_vm0, %v125_v3  ;;  %vm99_vm2 = vcmask 261120  }
   0x2   :  { %v118_v4 = vpack.c.bf16 %v16_v2, %v15_v1  ;;  %v14_v5 = vld [vmem:[%s162_s0] sm:$0xff] }
   0x3   :  { %v105_v6 = vld [vmem:[%s163_s2] ss:$0 sm:$0xff] }
   0x4   :  { %119 = vmatpush3.bf16.msra.mxu0 %v118_v4 }
   0x7   :  { %115 = vmatmul.mubr.msk.f32.vlgmr.msra.gmra.mrb[0].mxu0 %vm24_vm1, %v14_v5 }
  0xda   :  { %v94_v7 = vpop.f32.mrb[0].mxu0 }
  0xdb   :  { %v95_v8 = vadd.f32 %v105_v6, %v94_v7  ;;  %v116_v9 = vpop.f32.mrb[1].mxu0 }
  0xdd   :  { %v98_v10 = vmax.f32 %v95_v8, 0.0 }
  0xdf   :  { %100 = vst.msk [vmem:[%s164_s3] sm:$0xff] %vm99_vm2, %v98_v10 }

// kernel: _lambda_.3
= control target key start
LH: loop header
LB: loop body
LE: loop exit
PB: predicated region body
PF: predicated region fallthrough
CT: control target
= control target key end

     0   :  { %s708_s26 = smov 0   ;;  %s763_s0 = inlined_call_operand.vmem [shape: f32[32,32], index: 0, kind: input, shape index: {}]   ;;  %s764_s1 = inlined_call_operand.vmem [shape: f32[32,32], index: 1, kind: input, shape index: {}]   ;;  %s765_s2 = inlined_call_operand.vmem [shape: f32[32,128], index: 2, kind: input, shape index: {}]   ;;  %s766_s3 = inlined_call_operand.vmem [shape: f32[32,128], index: 3, kind: input, shape index: {}]   ;;  %s767_s4 = inlined_call_operand.vmem [shape: f32[1,128], index: 4, kind: input, shape index: {}]   ;;  %s768_s5 = inlined_call_operand.vmem [shape: f32[1,128], index: 5, kind: input, shape index: {}]   ;;  %s769_s6 = inlined_call_operand.<no memory space> [shape: f32[1,1], index: 6, kind: input, shape index: {}]   ;;  %s770_s7 = inlined_call_operand.vmem [shape: f32[32,128], index: 7, kind: output, shape index: {}]  }
   0x1   :  { %12 = sst [smem:[#allocation2]] %s769_s6 }
   0x2 LB: > { %s578_s27 = sadd.s32 4294967295, %s663_s26   ;;  %p582_p0 = scmp.ge.s32.totalorder %s663_s26, 1  ;;  %s663_s26 = sphi %s708_s26, %s18_s26  }
   0x3   : > { %p250_p1 = scmp.lt.s32.totalorder %s663_s26, 3 }
   0x5   : > { %p251_p2 = pnand %p582_p0, %p250_p1 }
   0x6   : > { %v313_v0 = vld [vmem:[%s766_s3] sm:$0xff] (!%p251_p2)  ;;  %v314_v1 = vld [vmem:[%s766_s3 + $0x8] sm:$0xff] (!%p251_p2)  ;;  %s583_s10 = sshll.u32 (!%p251_p2), %s578_s27, 1  ;;  %v315_v5 = vld [vmem:[%s766_s3 + $0x10] sm:$0xff] (!%p251_p2)  ;;  %vm317_vm0 = vcmask (!%p251_p2), 261120   ;;  %s504_s9 = sld [smem:[#allocation2]] (!%p251_p2) }
   0x7   : > { %254 = sbr.rel (%p251_p2) target bundleno = 390 (0x186), region = 48  ;;  %v307_v2 = vld [vmem:[%s765_s2] sm:$0xff] (!%p251_p2)  ;;  %v631_v3 = vpack.c.bf16 (!%p251_p2), %v314_v1, %v313_v0  ;;  %v308_v4 = vld [vmem:[%s765_s2 + $0x8] sm:$0xff] (!%p251_p2)  ;;  %v316_v6 = vld [vmem:[%s766_s3 + $0x18] sm:$0xff] (!%p251_p2)  ;;  %p288_p3 = scmp.lt.s32.totalorder (!%p251_p2), %s583_s10, 3 }
   0x8   : > { %v639_v7 = vpack.c.bf16 (!%p251_p2), %v308_v4, %v307_v2  ;;  %v635_v8 = vpack.c.bf16 (!%p251_p2), %v316_v6, %v315_v5  ;;  %v309_v9 = vld [vmem:[%s765_s2 + $0x10] sm:$0xff] (!%p251_p2)  ;;  %v310_v10 = vld [vmem:[%s765_s2 + $0x18] sm:$0xff] (!%p251_p2)  ;;  %v593_v20 = vld [vmem:[%s767_s4] ss:$0 sm:$0xff] (!%p251_p2) }
   0x9   : > { %632 = vmatprep.subr.bf16.mxu1 (!%p251_p2), %v631_v3  ;;  %v643_v11 = vpack.c.bf16 (!%p251_p2), %v310_v10, %v309_v9  ;;  %v594_v25 = vld [vmem:[%s768_s5] ss:$0 sm:$0xff] (!%p251_p2) }
   0xa   : > { %640 = vmatprep.subr.bf16.mxu0 (!%p251_p2), %v639_v7  ;;  %634 = vmatpush3.bf16.msra.mxu1 (!%p251_p2), %v631_v3 }
   0xb   : > { %642 = vmatpush3.bf16.msra.mxu0 (!%p251_p2), %v639_v7  ;;  %636 = vmatprep.subr.bf16.mxu1 (!%p251_p2), %v635_v8 }
   0xc   : > { %644 = vmatprep.subr.bf16.mxu0 (!%p251_p2), %v643_v11  ;;  %v505_v30 = vstv (!%p251_p2), %s504_s9 }
   0xe   : > { %s772_s10 = smov (!%p288_p3, %s583_s10), 3  ;;  %638 = vmatpush3.bf16.msra.mxu1 %v635_v8 }
   0xf   : > { %s740_s21 = sshll.u32 %s772_s10, 3  ;;  %646 = vmatpush3.bf16.msra.mxu0 %v643_v11 }
  0x10   : > { %s297_s24 = scalar_lea.vmem %s764_s1, %s740_s21  ;;  %s291_s28 = scalar_lea.vmem %s763_s0, %s740_s21 }
  0x11   : > { %v311_v12 = vld [vmem:[%s297_s24] sm:$0xff]  ;;  %v312_v14 = vld [vmem:[%s297_s24 + $0x8] sm:$0xff]  ;;  %s303_s12 = scalar_lea.vmem %s770_s7, %s740_s21 }
  0x12   : > { %v305_v13 = vld [vmem:[%s291_s28] sm:$0xff]  ;;  %617 = vmatprep.mubr.msk.f32.mxu1 %vm317_vm0, %v311_v12  ;;  %v306_v15 = vld [vmem:[%s291_s28 + $0x8] sm:$0xff] }
  0x13   : > { %628 = vmatprep.mubr.msk.f32.mxu0 %vm317_vm0, %v305_v13  ;;  %618 = vmatmul.mubr.msk.f32.vlgmr.msra.gmra.mrb[0].mxu1 %vm317_vm0, %v312_v14 }
  0x14   : > { %629 = vmatmul.mubr.msk.f32.vlgmr.msra.gmra.mrb[0].mxu0 %vm317_vm0, %v306_v15 }
  0xe6   : > { %v619_v16 = vpop.f32.mrb[0].mxu1 }
  0xe7   : > { %v630_v17 = vpop.f32.mrb[0].mxu0  ;;  %v390_v18 = vpop.f32.mrb[1].mxu1 }
  0xe8   : > { %v477_v19 = vadd.f32 %v630_v17, %v619_v16  ;;  %v471_v21 = vpop.f32.mrb[1].mxu0 }
  0xe9   : > { %v472_v22 = vadd.f32 %v471_v21, %v390_v18 }
  0xea   : > { %v488_v23 = vadd.f32 %v593_v20, %v477_v19 }
  0xeb   : > { %v487_v24 = vadd.f32 %v593_v20, %v472_v22 }
  0xec   : > { %v490_v27 = vmax.f32 %v488_v23, 0.0 }
  0xed   : > { %v489_v26 = vmax.f32 %v487_v24, 0.0 }
  0xee   : > { %v499_v29 = vmul.f32 %v594_v25, %v490_v27 }
  0xef   : > { %v498_v28 = vmul.f32 %v594_v25, %v489_v26 }
  0xf1   : > { %500 = vadd.xlane.f32.xlu0 %v498_v28 }
  0xf5   : > { %502 = vadd.xlane.f32.xlu0 %v499_v29 }
 0x17e   : > { %v501_v31 = vpop.xlane.xlu0 %500 }
 0x17f   : > { %v506_v32 = vadd.f32 %v505_v30, %v501_v31 }
 0x181   : > { %508 = vst [vmem:[%s303_s12] sm:$0xff] %v506_v32 }
 0x182   : > { %v503_v33 = vpop.xlane.xlu0 %502 }
 0x183   : > { %v507_v34 = vadd.f32 %v505_v30, %v503_v33 }
 0x185   : > { %509 = vst [vmem:[%s303_s12 + $0x8] sm:$0xff] %v507_v34 }
 0x186 PF: > { %s18_s26 = sadd.s32 1, %s663_s26  }
 0x187   : > { %p15_p4 = scmp.ge.s32.totalorder %s18_s26, 4  }
 0x189   :  { %17 = sbr.rel (!%p15_p4) target bundleno = 2 (0x2), region = 81 }

</bundles_post_ra>
